<compile_context>
chip_gen: v5e
topology: v5e:2x2
jax: 0.10.0
libtpu: 0.0.40
codegen_flags: <defaults>
</compile_context>

<pallas_src>
import functools

import jax
import jax.numpy as jnp
from jax.experimental import pallas as pl
from jax.experimental.pallas import tpu as pltpu


# ----------------------------- static architecture --------------------------

IN_CH  = [1, 8, 3, 5, 8]
OUT_CH = [8, 3, 5, 8, 1]          # filter_numbers
KSIZE  = [7, 5, 3, 5, 7]          # filter_sizes
PADS   = [0, 2, 1, 2, 0]          # per-layer conv padding in the Sequential
HAS_BN = [True, True, True, True, False]
N_LAYERS = 5

_CONT_H = 32    # container rows  (multiple of 8   -> native sublane rolls)
_CONT_W = 128   # container lanes (multiple of 128 -> native lane rolls)


def _param_offsets():
    w_offs, c_offs, w_off, c_off = [], [], 0, 0
    for i in range(N_LAYERS):
        w_offs.append(w_off)
        c_offs.append(c_off)
        w_off += OUT_CH[i] * IN_CH[i] * KSIZE[i] * KSIZE[i]
        c_off += OUT_CH[i]
    return tuple(w_offs), tuple(c_offs), w_off, c_off


W_OFFS, C_OFFS, W_TOTAL, C_TOTAL = _param_offsets()


def _layer_dims(H, W):
    """Per layer: (Hin, Win, Ho, Wo), with Hin/Win the un-padded input dims."""
    dims, h, w = [], H, W
    for i in range(N_LAYERS):
        assert h + 2 * PADS[i] <= _CONT_H and w + 2 * PADS[i] <= _CONT_W, (
            "spatial extent does not fit the fixed VMEM containers")
        ho = h + 2 * PADS[i] - KSIZE[i] + 1
        wo = w + 2 * PADS[i] - KSIZE[i] + 1
        assert ho > 0 and wo > 0
        dims.append((h, w, ho, wo))
        h, w = ho, wo
    return tuple(dims)


# ------------------------- pltpu.roll shift convention -----------------------

def _roll_probe_kernel(x_ref, o_ref):
    o_ref[...] = pltpu.roll(x_ref[...], 3, 1)


@functools.lru_cache(maxsize=None)
def _roll_shift_sign():
    """+1 if pltpu.roll follows jnp.roll's shift convention (current JAX), else -1.

    One tiny one-off probe so the statically baked roll shifts in the fused
    kernel stay correct across JAX versions.
    """
    x = jnp.tile(jnp.arange(128, dtype=jnp.float32)[None, :], (8, 1))
    y = pl.pallas_call(
        _roll_probe_kernel,
        out_shape=jax.ShapeDtypeStruct((8, 128), jnp.float32),
    )(x)
    return 1 if bool(jnp.array_equal(y, jnp.roll(x, 3, axis=1))) else -1


# --------------------------------- kernel -----------------------------------

def _ournet_kernel(x_ref, w_ref, b_ref, scale_ref, shift_ref, o_ref, *planes,
                   dims, roll_sign):
    """Whole 5-layer network for one batch element; intermediates stay in VMEM.

    x_ref:     (1, Cin0, H, W)   VMEM   one input image
    w_ref:     (W_TOTAL,)        SMEM   all conv weights (OIHW, flat, layer-major)
    b_ref:     (C_TOTAL,)        SMEM   all conv biases
    scale_ref: (C_TOTAL,)        SMEM   gamma/sqrt(var+eps)   (1.0 where no BN)
    shift_ref: (C_TOTAL,)        SMEM   beta - mean*scale     (0.0 where no BN)
    o_ref:     (1, 1, Ho5, Wo5)  VMEM
    planes:    N_LAYERS VMEM containers (C_l, 32, 128): each layer's input
               channel planes, logical data in the top-left corner, zeros
               elsewhere (so cyclic rolls reproduce zero padding exactly).
    """

    def roll2d(v, shift, axis):
        # result[.., i, ..] = v[.., (i - shift) mod n, ..]   (jnp.roll convention)
        s = (roll_sign * shift) % v.shape[axis]
        return pltpu.roll(v, s, axis) if s else v

    # Zero every container, then drop the input image into container 0.
    for p_ref in planes:
        p_ref[...] = jnp.zeros(p_ref.shape, p_ref.dtype)
    Hin0, Win0 = dims[0][0], dims[0][1]
    for ci in range(IN_CH[0]):
        planes[0][ci, 0:Hin0, 0:Win0] = x_ref[0, ci]

    def conv_relu_bn(layer, src, store_out_plane):
        Cin, Cout, K, pad = IN_CH[layer], OUT_CH[layer], KSIZE[layer], PADS[layer]
        _, _, Ho, Wo = dims[layer]
        w_off, c_off = W_OFFS[layer], C_OFFS[layer]

        def ci_body(ci, accs):
            accs = list(accs)
            plane = src[ci]                          # (32, 128) container plane
            if pad:
                plane = roll2d(plane, pad, 0)        # virtual top/bottom zero pad
            w_ci = w_off + ci * (K * K)              # OIHW flat base for this ci
            for kh in range(K):
                slab = plane[kh:kh + Ho, :]          # (Ho, 128) aligned row slab
                for kw in range(K):
                    # lane shift = +pad (virtual zero pad) - kw (window offset); XLU op
                    shifted = roll2d(slab, pad - kw, 1)
                    for co in range(Cout):
                        wsc = w_ref[w_ci + co * (Cin * K * K) + kh * K + kw]
                        accs[co] = accs[co] + shifted * wsc
            return tuple(accs)

        accs = tuple(jnp.zeros((Ho, _CONT_W), jnp.float32) for _ in range(Cout))
        if Cin == 1:
            accs = ci_body(0, accs)                  # fully unrolled
        else:
            # fori over input channels keeps the (fully unrolled) body compact
            accs = jax.lax.fori_loop(0, Cin, ci_body, accs)

        for co in range(Cout):
            y = jnp.maximum(accs[co][:, :Wo] + b_ref[c_off + co], 0.0)   # bias + ReLU
            y = y * scale_ref[c_off + co] + shift_ref[c_off + co]        # folded BN (eval)
            store_out_plane(co, y)                                        # (Ho, Wo)

    # layers 1..4: write the next layer's input container (kept zero-bordered)
    for layer in range(N_LAYERS - 1):
        dst = planes[layer + 1]

        def store(co, y, dst=dst):
            dst[co, 0:y.shape[0], 0:y.shape[1]] = y

        conv_relu_bn(layer, planes[layer], store)

    # layer 5: write the kernel output (ReLU only; scale=1, shift=0)
    def store_final(co, y):
        o_ref[0, co] = y

    conv_relu_bn(N_LAYERS - 1, planes[N_LAYERS - 1], store_final)

    # TODO(synk): Dropout2d(p=0.3) is the identity (eval) and BatchNorm2d uses folded
    #             running statistics; training-mode behaviour is not implemented.


# --------------------------------- wrapper ----------------------------------

def ournet_pallas_call(x, flat_w, flat_b, flat_scale, flat_shift):
    N, Cin0, H, W = x.shape
    assert Cin0 == IN_CH[0]
    assert flat_w.shape == (W_TOTAL,) and flat_b.shape == (C_TOTAL,)
    dims = _layer_dims(H, W)
    Ho5, Wo5 = dims[-1][2], dims[-1][3]

    # one (C, 32, 128) container stack per layer input (incl. the image itself)
    chans = [IN_CH[0]] + [OUT_CH[i] for i in range(N_LAYERS - 1)]
    scratch_shapes = [pltpu.VMEM((c, _CONT_H, _CONT_W), jnp.float32) for c in chans]

    kernel = functools.partial(_ournet_kernel, dims=dims,
                               roll_sign=_roll_shift_sign())

    return pl.pallas_call(
        kernel,
        out_shape=jax.ShapeDtypeStruct((N, OUT_CH[-1], Ho5, Wo5), jnp.float32),
        grid_spec=pltpu.PrefetchScalarGridSpec(
            num_scalar_prefetch=0,
            grid=(N,),                                   # one image per grid step
            in_specs=[
                pl.BlockSpec((1, Cin0, H, W), lambda n: (n, 0, 0, 0)),
                pl.BlockSpec(memory_space=pltpu.MemorySpace.SMEM),   # flat conv weights
                pl.BlockSpec(memory_space=pltpu.MemorySpace.SMEM),   # conv biases
                pl.BlockSpec(memory_space=pltpu.MemorySpace.SMEM),   # BN scales
                pl.BlockSpec(memory_space=pltpu.MemorySpace.SMEM),   # BN shifts
            ],
            out_specs=pl.BlockSpec((1, OUT_CH[-1], Ho5, Wo5),
                                   lambda n: (n, 0, 0, 0)),
            scratch_shapes=scratch_shapes,
        ),
        # batch axis "parallel": shards across the two TensorCores on v7x
        compiler_params=pltpu.CompilerParams(dimension_semantics=("parallel",)),
    )(x, flat_w, flat_b, flat_scale, flat_shift)


# ---------------- parameter setup (deterministic, synthetic) -----------------

def init_params(key):
    params = []
    for i in range(N_LAYERS):
        key, k1, k2, k3, k4, k5, k6 = jax.random.split(key, 7)
        fan_in = IN_CH[i] * KSIZE[i] * KSIZE[i]
        bound = 1.0 / (fan_in ** 0.5)
        w = jax.random.uniform(k1, (OUT_CH[i], IN_CH[i], KSIZE[i], KSIZE[i]),
                               jnp.float32, -bound, bound)
        b = jax.random.uniform(k2, (OUT_CH[i],), jnp.float32, -bound, bound)
        if HAS_BN[i]:
            gamma = jax.random.uniform(k3, (OUT_CH[i],), jnp.float32, 0.5, 1.5)
            beta = 0.1 * jax.random.normal(k4, (OUT_CH[i],), jnp.float32)
            mean = 0.1 * jax.random.normal(k5, (OUT_CH[i],), jnp.float32)
            var = jax.random.uniform(k6, (OUT_CH[i],), jnp.float32, 0.5, 1.5)
            scale = gamma / jnp.sqrt(var + 1e-5)
            shift = beta - mean * scale
        else:
            scale = jnp.ones((OUT_CH[i],), jnp.float32)
            shift = jnp.zeros((OUT_CH[i],), jnp.float32)
        params.append(dict(w=w, b=b, scale=scale, shift=shift, pad=PADS[i]))
    return params


def ournet_forward_pallas(x, params):
    flat_w = jnp.concatenate([p["w"].reshape(-1) for p in params])
    flat_b = jnp.concatenate([p["b"] for p in params])
    flat_scale = jnp.concatenate([p["scale"] for p in params])
    flat_shift = jnp.concatenate([p["shift"] for p in params])
    return ournet_pallas_call(x, flat_w, flat_b, flat_scale, flat_shift)


def ournet_reference(x, params):
    # pure-JAX reference for correctness checking (eval-mode semantics)
    for p in params:
        y = jax.lax.conv_general_dilated(
            x, p["w"], window_strides=(1, 1),
            padding=[(p["pad"], p["pad"]), (p["pad"], p["pad"])],
            dimension_numbers=("NCHW", "OIHW", "NCHW"))
        y = y + p["b"][None, :, None, None]
        y = jnp.maximum(y, 0.0)
        y = y * p["scale"][None, :, None, None] + p["shift"][None, :, None, None]
        x = y
    return x


if __name__ == "__main__":
    key = jax.random.PRNGKey(0)
    kx, kp = jax.random.split(key)
    N, H, W = 2, 28, 28
    x = jax.random.normal(kx, (N, 1, H, W), jnp.float32)   # NCHW, 1 input channel

    params = init_params(kp)

    out = ournet_forward_pallas(x, params)
    out = jax.block_until_ready(out)
    assert out.shape == (N, 1, H - 12, W - 12), out.shape

    ref = ournet_reference(x, params)
    if not bool(jnp.allclose(out, ref, rtol=1e-4, atol=1e-3)):
        raise AssertionError("Pallas output does not match JAX reference")

    print("KERNEL_OK")
</pallas_src>

<mosaic_0001>
module attributes {stable_mosaic.version = 11 : i64} {
  func.func @_roll_probe_kernel(%arg0: memref<8x128xf32, #tpu.memory_space<vmem>>, %arg1: memref<8x128xf32, #tpu.memory_space<vmem>>) attributes {dimension_semantics = [], scalar_prefetch = 0 : i64, scratch_operands = 0 : i64, tpu.core_type = #tpu.core_type<tc>} {
    %c0 = arith.constant 0 : index
    %c0_0 = arith.constant 0 : index
    %0 = vector.load %arg0[%c0, %c0_0] : memref<8x128xf32, #tpu.memory_space<vmem>>, vector<8x128xf32>
    %c3_i32 = arith.constant 3 : i32
    %1 = tpu.dynamic_rotate %0 by %c3_i32 dim 1 : vector<8x128xf32>, i32 -> vector<8x128xf32>
    %c0_1 = arith.constant 0 : index
    %c0_2 = arith.constant 0 : index
    %2 = vector.load %arg1[%c0_1, %c0_2] : memref<8x128xf32, #tpu.memory_space<vmem>>, vector<8x128xf32>
    tpu.vector_store %arg1[%c0_1, %c0_2], %1 {strides = array<i32>} : memref<8x128xf32, #tpu.memory_space<vmem>>, vector<8x128xf32>,
    return
  }
}

</mosaic_0001>

<bundles_post_ra>
// kernel: tpu_custom_call.1
= control target key start
LH: loop header
LB: loop body
LE: loop exit
PB: predicated region body
PF: predicated region fallthrough
CT: control target
= control target key end

     0   :  { %6 = vsyncpa [#allocation3], 0  ;;  %s118_s0 = inlined_call_operand.hbm [shape: f32[8,128], index: 0, kind: input, shape index: {}]   ;;  %s119_s1 = inlined_call_operand.hbm [shape: f32[8,128], index: 1, kind: output, shape index: {}]  }
   0x1   :  { %7 = vsyncpa [#allocation4], 0  ;;  %s13_s8 = sshll.u32 %s118_s0, 4  ;;  %s99_s9 = smov [#allocation2]   ;;  %s14_s8 = int_to_ptr.hbm [resolvable:$true] %s13_s8 }
   0x2   :  { %s15_s10 = sshll.u32 %s99_s9, 4  ;;  %s16_s10 = int_to_ptr.vmem [resolvable:$true] %s15_s10 }
   0x3   :  { %18 = dma.hbm_to_vmem [thread:$0]  %s14_s8, 128, %s16_s10, [#allocation3]  }
   0x4   :  { %95 = dma.done.wait [#allocation3], 128  }
   0x5   :  { %96 = vsyncadd [#allocation3], 4294967168  ;;  %v23_v0 = vld [vmem:[#allocation2] sm:$0xff]  ;;  %s100_s11 = smov 3   ;;  %s101_s12 = smov [#allocation5]  }
   0x6   :  { %24 = vrot.lane.b32.xlu0 %v23_v0, %s100_s11  ;;  %s32_s13 = sshll.u32 %s101_s12, 4  ;;  %s34_s16 = sshll.u32 %s119_s1, 4  ;;  %s33_s13 = int_to_ptr.vmem [resolvable:$true] %s32_s13  ;;  %s35_s16 = int_to_ptr.hbm [resolvable:$true] %s34_s16 }
  0x78   :  { %v25_v1 = vpop.permute.xlu0 %24 }
  0x79   :  { %26 = vst [vmem:[#allocation5] sm:$0xff] %v25_v1 }
  0x7a   :  { %37 = dma.vmem_to_hbm [thread:$0]  %s33_s13, 128, %s35_s16, [#allocation4]  }
  0x7b   :  { %97 = dma.done.wait [#allocation4], 128  }
  0x7c   :  { %98 = vsyncadd [#allocation4], 4294967168 }
  0x7d   :  { %42 = vsyncpa [#allocation3], 1 }
  0x7e   :  { %43 = vsyncpa [#allocation4], 1 }

</bundles_post_ra>
